<compile_context>
chip_gen: v5e
topology: v5e:2x2
jax: 0.10.0
libtpu: 0.0.40
codegen_flags: <defaults>
</compile_context>

<pallas_src>
import functools

import jax
import jax.numpy as jnp
from jax.experimental import pallas as pl
from jax.experimental.pallas import tpu as pltpu


def _attention_kernel(e_ref, w_ref, a_ref, rep_ref, *, batch, nodes):
    # e_ref:   (B*N, F)  all batch elements, node-major (wrapper collapsed B,N)
    # w_ref:   (F, F)    shared weight matrix
    # a_ref:   (F, 8)    shared attention projection
    # rep_ref: (B, F)    output graph representations (lane-dense)
    e = e_ref[...]                                                   # (B*N, F)
    w = w_ref[...]                                                   # (F, F)
    a = a_ref[...]                                                   # (F, 8)

    # Fold the two matmuls: (e @ W) @ a == e @ (W @ a); Wa computed once.
    # Also fold the 1/8 of the later column-mean into Wa: leaky_relu is
    # positively homogeneous, so mean_k lrelu(x_k) == sum_k lrelu(x_k / 8).
    wa = jnp.dot(w, a, preferred_element_type=jnp.float32) * (1.0 / 8.0)  # (F, 8)
    s = jnp.dot(e, wa, preferred_element_type=jnp.float32)           # (B*N, 8)
    s = jnp.where(s > 0, s, 0.2 * s)                                 # leaky_relu(0.2)

    # One logit per node (mean over the size-8 projection axis, /8 pre-folded).
    logits = jnp.sum(s, axis=1, keepdims=True)                       # (B*N, 1)

    # Per-batch softmax over the N node rows.  Softmax is shift-invariant, so a
    # single global max keeps exp() bounded while preserving each batch's result.
    m = jnp.max(logits, axis=0, keepdims=True)                       # (1, 1)
    p = jnp.exp(logits - m)                                          # (B*N, 1)

    # Segment-selection matrix: sel[b, j] = 1 iff flat row j belongs to batch b.
    # Built from iotas (no integer division, no reshapes/transposes).
    row = jax.lax.broadcasted_iota(jnp.int32, (batch, batch * nodes), 0)
    col = jax.lax.broadcasted_iota(jnp.int32, (batch, batch * nodes), 1)
    sel = ((col >= row * nodes) & (col < (row + 1) * nodes)).astype(jnp.float32)

    # Per-batch weighted sums as lane-major matmuls:
    #   num[b, f] = sum_{n in b} p[n] * e[n, f]      den[b] = sum_{n in b} p[n]
    num = jnp.dot(sel, p * e, preferred_element_type=jnp.float32)    # (B, F)
    den = jnp.dot(sel, p, preferred_element_type=jnp.float32)        # (B, 1)

    rep = num * pl.reciprocal(den, approx=False)                     # (B, F)
    rep_ref[...] = rep.astype(rep_ref.dtype)


def simple_attention_forward(embedding, weight_matrix, a):
    """embedding: (B, N, F); weight_matrix: (F, F); a: (F, 8). Returns ((B, F, 1), None)."""
    B, N, F = embedding.shape
    e2d = embedding.reshape(B * N, F)   # collapse leading dims (free in XLA)
    kernel = functools.partial(_attention_kernel, batch=B, nodes=N)
    rep = pl.pallas_call(
        kernel,
        out_shape=jax.ShapeDtypeStruct((B, F), embedding.dtype),
        grid=(1,),
        in_specs=[
            pl.BlockSpec((B * N, F), lambda i: (0, 0)),   # all embeddings, one slab
            pl.BlockSpec((F, F), lambda i: (0, 0)),       # shared weight matrix
            pl.BlockSpec((F, 8), lambda i: (0, 0)),       # shared attention projection
        ],
        out_specs=pl.BlockSpec((B, F), lambda i: (0, 0)),
        compiler_params=pltpu.CompilerParams(
            dimension_semantics=("arbitrary",),
        ),
    )(e2d, weight_matrix, a)
    # Reshape to the module's (B, F, 1) output layout (free outside the kernel).
    return rep.reshape(B, F, 1), None


def xavier_uniform(key, shape, dtype=jnp.float32):
    fan_in, fan_out = shape[0], shape[1]
    bound = (6.0 / (fan_in + fan_out)) ** 0.5
    return jax.random.uniform(key, shape, dtype=dtype, minval=-bound, maxval=bound)


def reference_forward(embedding, weight_matrix, a):
    # Keeps the original (un-folded) PyTorch op ordering to validate the folds.
    ew = jnp.einsum("bnf,fg->bng", embedding, weight_matrix)
    aew = jnp.einsum("bng,gk->bnk", ew, a)
    aew = jnp.where(aew > 0, aew, 0.2 * aew)
    avg = jnp.mean(aew, axis=2, keepdims=True)
    wts = jax.nn.softmax(avg, axis=1)
    rep = jnp.einsum("bnf,bno->bfo", embedding, wts)
    return rep


if __name__ == "__main__":
    # Small shapes consistent with the module: B=2 graphs, N=16 nodes,
    # F=32 features (= args.filters_dim[-1]).
    B, N, F = 2, 16, 32
    key = jax.random.PRNGKey(0)
    k_emb, k_w, k_a = jax.random.split(key, 3)

    embedding = jax.random.normal(k_emb, (B, N, F), dtype=jnp.float32)
    weight_matrix = xavier_uniform(k_w, (F, F))
    a = xavier_uniform(k_a, (F, 8))

    rep, none_out = simple_attention_forward(embedding, weight_matrix, a)
    rep = jax.block_until_ready(rep)

    ref = reference_forward(embedding, weight_matrix, a)
    assert rep.shape == (B, F, 1), rep.shape
    assert none_out is None
    assert jnp.allclose(rep, ref, atol=1e-5, rtol=1e-5), "mismatch vs reference"

    print("KERNEL_OK")
</pallas_src>

<mosaic_0001>
module attributes {stable_mosaic.version = 11 : i64} {
  func.func @_attention_kernel(%arg0: i32, %arg1: memref<32x32xf32, #tpu.memory_space<vmem>>, %arg2: memref<32x32xf32, #tpu.memory_space<vmem>>, %arg3: memref<32x8xf32, #tpu.memory_space<vmem>>, %arg4: memref<2x32xf32, #tpu.memory_space<vmem>>) attributes {dimension_semantics = [#tpu.dimension_semantics<arbitrary>], iteration_bounds = array<i64: 1>, scalar_prefetch = 0 : i64, scratch_operands = 0 : i64, tpu.core_type = #tpu.core_type<tc>, window_params = [{pipeline_mode = #tpu.pipeline_mode<synchronous>, transform_indices = @transform_0, window_bounds = array<i64: 32, 32>}, {pipeline_mode = #tpu.pipeline_mode<synchronous>, transform_indices = @transform_1, window_bounds = array<i64: 32, 32>}, {pipeline_mode = #tpu.pipeline_mode<synchronous>, transform_indices = @transform_2, window_bounds = array<i64: 32, 8>}, {pipeline_mode = #tpu.pipeline_mode<synchronous>, transform_indices = @transform_3, window_bounds = array<i64: 2, 32>}]} {
    %c0 = arith.constant 0 : index
    %c0_0 = arith.constant 0 : index
    %0 = vector.load %arg1[%c0, %c0_0] : memref<32x32xf32, #tpu.memory_space<vmem>>, vector<32x32xf32>
    %c0_1 = arith.constant 0 : index
    %c0_2 = arith.constant 0 : index
    %1 = vector.load %arg2[%c0_1, %c0_2] : memref<32x32xf32, #tpu.memory_space<vmem>>, vector<32x32xf32>
    %c0_3 = arith.constant 0 : index
    %c0_4 = arith.constant 0 : index
    %2 = vector.load %arg3[%c0_3, %c0_4] : memref<32x8xf32, #tpu.memory_space<vmem>>, vector<32x8xf32>
    %cst = arith.constant dense<0.000000e+00> : vector<32x8xf32>
    %3 = tpu.matmul %1, %2, %cst {dimension_numbers = #tpu.dot_dimension_numbers<[1], [0], [0], [1], [0, 0, 1, 1], [], []>} : vector<32x32xf32>, vector<32x8xf32>, vector<32x8xf32> -> vector<32x8xf32>
    %cst_5 = arith.constant 1.250000e-01 : f32
    %4 = vector.broadcast %cst_5 : f32 to vector<32x8xf32>
    %5 = arith.mulf %3, %4 : vector<32x8xf32>
    %cst_6 = arith.constant dense<0.000000e+00> : vector<32x8xf32>
    %6 = tpu.matmul %0, %5, %cst_6 {dimension_numbers = #tpu.dot_dimension_numbers<[1], [0], [0], [1], [0, 0, 1, 1], [], []>} : vector<32x32xf32>, vector<32x8xf32>, vector<32x8xf32> -> vector<32x8xf32>
    %cst_7 = arith.constant 0.000000e+00 : f32
    %7 = vector.broadcast %cst_7 : f32 to vector<32x8xf32>
    %8 = arith.cmpf ogt, %6, %7 : vector<32x8xf32>
    %cst_8 = arith.constant 2.000000e-01 : f32
    %9 = vector.broadcast %cst_8 : f32 to vector<32x8xf32>
    %10 = arith.mulf %9, %6 : vector<32x8xf32>
    %11 = arith.select %8, %6, %10 : vector<32x8xi1>, vector<32x8xf32>
    %cst_9 = arith.constant dense<0.000000e+00> : vector<32xf32>
    %12 = vector.multi_reduction <add>, %11, %cst_9 [1] : vector<32x8xf32> to vector<32xf32>
    %13 = vector.shape_cast %12 : vector<32xf32> to vector<32x1xf32>
    %cst_10 = arith.constant dense<0xFF800000> : vector<1xf32>
    %14 = vector.multi_reduction <maximumf>, %13, %cst_10 [0] : vector<32x1xf32> to vector<1xf32>
    %15 = vector.shape_cast %14 : vector<1xf32> to vector<1x1xf32>
    %16 = vector.broadcast %15 : vector<1x1xf32> to vector<32x1xf32>
    %17 = arith.subf %13, %16 : vector<32x1xf32>
    %18 = math.exp %17 : vector<32x1xf32>
    %19 = tpu.iota {dimensions = array<i32: 0>} : vector<2x32xi32>
    %20 = tpu.iota {dimensions = array<i32: 1>} : vector<2x32xi32>
    %c16_i32 = arith.constant 16 : i32
    %21 = vector.broadcast %c16_i32 : i32 to vector<2x32xi32>
    %22 = arith.muli %19, %21 : vector<2x32xi32>
    %23 = arith.cmpi sge, %20, %22 : vector<2x32xi32>
    %c1_i32 = arith.constant 1 : i32
    %24 = vector.broadcast %c1_i32 : i32 to vector<2x32xi32>
    %25 = arith.addi %19, %24 : vector<2x32xi32>
    %c16_i32_11 = arith.constant 16 : i32
    %26 = vector.broadcast %c16_i32_11 : i32 to vector<2x32xi32>
    %27 = arith.muli %25, %26 : vector<2x32xi32>
    %28 = arith.cmpi slt, %20, %27 : vector<2x32xi32>
    %29 = arith.andi %23, %28 : vector<2x32xi1>
    %30 = arith.extui %29 : vector<2x32xi1> to vector<2x32xi32>
    %31 = arith.sitofp %30 : vector<2x32xi32> to vector<2x32xf32>
    %32 = vector.broadcast %18 : vector<32x1xf32> to vector<32x32xf32>
    %33 = arith.mulf %32, %0 : vector<32x32xf32>
    %cst_12 = arith.constant dense<0.000000e+00> : vector<2x32xf32>
    %34 = tpu.matmul %31, %33, %cst_12 {dimension_numbers = #tpu.dot_dimension_numbers<[1], [0], [0], [1], [0, 0, 1, 1], [], []>} : vector<2x32xf32>, vector<32x32xf32>, vector<2x32xf32> -> vector<2x32xf32>
    %cst_13 = arith.constant dense<0.000000e+00> : vector<2x1xf32>
    %35 = tpu.matmul %31, %18, %cst_13 {dimension_numbers = #tpu.dot_dimension_numbers<[1], [0], [0], [1], [0, 0, 1, 1], [], []>} : vector<2x32xf32>, vector<32x1xf32>, vector<2x1xf32> -> vector<2x1xf32>
    %36 = tpu.reciprocal %35 : vector<2x1xf32> -> vector<2x1xf32>
    %37 = vector.broadcast %36 : vector<2x1xf32> to vector<2x32xf32>
    %38 = arith.mulf %34, %37 : vector<2x32xf32>
    %c0_14 = arith.constant 0 : index
    %c0_15 = arith.constant 0 : index
    %39 = vector.load %arg4[%c0_14, %c0_15] : memref<2x32xf32, #tpu.memory_space<vmem>>, vector<2x32xf32>
    tpu.vector_store %arg4[%c0_14, %c0_15], %38 {strides = array<i32>} : memref<2x32xf32, #tpu.memory_space<vmem>>, vector<2x32xf32>,
    return
  }
  func.func @transform_0(%arg0: i32) -> (i32, i32) {
    %c0_i32 = arith.constant 0 : i32
    %c0_i32_0 = arith.constant 0 : i32
    %c0_i32_1 = arith.constant 0 : i32
    return %c0_i32, %c0_i32_0 : i32, i32
  }
  func.func @transform_1(%arg0: i32) -> (i32, i32) {
    %c0_i32 = arith.constant 0 : i32
    %c0_i32_0 = arith.constant 0 : i32
    %c0_i32_1 = arith.constant 0 : i32
    return %c0_i32, %c0_i32_0 : i32, i32
  }
  func.func @transform_2(%arg0: i32) -> (i32, i32) {
    %c0_i32 = arith.constant 0 : i32
    %c0_i32_0 = arith.constant 0 : i32
    %c0_i32_1 = arith.constant 0 : i32
    return %c0_i32, %c0_i32_0 : i32, i32
  }
  func.func @transform_3(%arg0: i32) -> (i32, i32) {
    %c0_i32 = arith.constant 0 : i32
    %c0_i32_0 = arith.constant 0 : i32
    %c0_i32_1 = arith.constant 0 : i32
    return %c0_i32, %c0_i32_0 : i32, i32
  }
}

</mosaic_0001>

<bundles_post_ra>
// kernel: tpu_custom_call.1
= control target key start
LH: loop header
LB: loop body
LE: loop exit
PB: predicated region body
PF: predicated region fallthrough
CT: control target
= control target key end

     0   :  { %8 = vsyncpa [#allocation3], 0  ;;  %s461_s0 = inlined_call_operand.vmem [shape: f32[32,32], index: 0, kind: input, shape index: {}]   ;;  %s462_s1 = inlined_call_operand.hbm [shape: f32[32,32], index: 1, kind: input, shape index: {}]   ;;  %s463_s2 = inlined_call_operand.vmem [shape: f32[32,8], index: 2, kind: input, shape index: {}]   ;;  %s464_s3 = inlined_call_operand.hbm [shape: f32[2,32], index: 3, kind: output, shape index: {}]  }
   0x1   :  { %9 = vsyncpa [#allocation4], 0  ;;  %s16_s14 = sshll.u32 %s462_s1, 4  ;;  %s363_s15 = smov [#allocation2]   ;;  %s17_s14 = int_to_ptr.hbm [resolvable:$true] %s16_s14 }
   0x2   :  { %s18_s16 = sshll.u32 %s363_s15, 4  ;;  %s364_s17 = smov 128   ;;  %s19_s16 = int_to_ptr.vmem [resolvable:$true] %s18_s16 }
   0x3   :  { %s365_s18 = smov 8  }
   0x4   :  { %24 = dma.hbm_to_vmem [thread:$0]  %s17_s14, 512, %s19_s16, [#allocation3], %s364_s17, %s364_s17, %s365_s18  }
   0x5   :  { %359 = dma.done.wait [#allocation3], 512  }
   0x6   :  { %360 = vsyncadd [#allocation3], 4294966784  ;;  %v42_v0 = vld [vmem:[%s463_s2 + $0x18] sm:$0xff]  ;;  %v41_v1 = vld [vmem:[%s463_s2 + $0x10] sm:$0xff]  ;;  %vm43_vm0 = vcmask 261120   ;;  %vm142_vm2 = vcmask 64512   ;;  %v176_v46 = vlaneseq }
   0x7   :  { %68 = vmatpush.msra.mxu0 %v42_v0  ;;  %285 = vmatpush.msra.mxu2 %v42_v0  ;;  %v40_v2 = vld [vmem:[%s463_s2 + $0x8] sm:$0xff]  ;;  %v39_v3 = vld [vmem:[%s463_s2] sm:$0xff]  ;;  %v38_v5 = vld [vmem:[#allocation2 + $0x18] sm:$0xff]  ;;  %s264_s9 = sshll.u32 %s464_s3, 4  ;;  %vm255_vm13 = vcmask 254976   ;;  %s265_s9 = int_to_ptr.hbm [resolvable:$true] %s264_s9 }
   0x8   :  { %v35_v4 = vld [vmem:[#allocation2] sm:$0xff]  ;;  %v36_v6 = vld [vmem:[#allocation2 + $0x8] sm:$0xff]  ;;  %v37_v7 = vld [vmem:[#allocation2 + $0x10] sm:$0xff]  ;;  %v177_v49 = vshrl.u32 %v176_v46, 7  ;;  %v179_v60 = vand.u32 127, %v176_v46 }
   0x9   :  { %69 = vmatpush.msra.mxu0 %v41_v1  ;;  %286 = vmatpush.msra.mxu2 %v41_v1  ;;  %v411_v16 = vld [vmem:[%s461_s0] sm:$0xff]  ;;  %v416_v17 = vld [vmem:[%s461_s0 + $0x18] sm:$0xff]  ;;  %v425_v18 = vld [vmem:[%s461_s0 + $0x8] sm:$0xff] }
   0xa   :  { %v432_v19 = vld [vmem:[%s461_s0 + $0x10] sm:$0xff]  ;;  %v182_v55 = vadd.s32 1, %v177_v49  ;;  %v180_v61 = vmul.u32 16, %v177_v49  ;;  %s368_s0 = smov [#allocation5]  }
   0xb   :  { %70 = vmatpush.msra.mxu0 %v40_v2  ;;  %287 = vmatpush.msra.mxu2 %v40_v2  ;;  %s262_s6 = sshll.u32 %s368_s0, 4  ;;  %s263_s6 = int_to_ptr.vmem [resolvable:$true] %s262_s6 }
   0xc   :  { %v183_v62 = vmul.u32 16, %v182_v55  ;;  %vm440_vm6 = vcmp.ge.s32.totalorder %v179_v60, %v180_v61 }
   0xd   :  { %71 = vmatpush.msra.mxu0 %v39_v3  ;;  %288 = vmatpush.msra.mxu2 %v39_v3 }
   0xe   :  { %274 = vmatmul.msk.f32.vlgmr.msra.gmra.mxu0 %vm43_vm0, %v35_v4  ;;  %277 = vmatmul.msk.f32.vlgmr.msra.gmra.mxu2 %vm43_vm0, %v38_v5  ;;  %vm444_vm7 = vcmp.lt.s32.totalorder %v179_v60, %v183_v62 }
   0xf   :  { %vm185_vm8 = vmand %vm440_vm6, %vm444_vm7 }
  0x16   :  { %275 = vmatmul.msk.f32.gmra.mxu0 %vm43_vm0, %v36_v6 }
  0x1e   :  { %276 = vmatmul.msk.f32.gmra.mxu0 %vm43_vm0, %v37_v7 }
  0x8b   :  { %v73_v8 = vpop.f32.mrf.mxu0 }
  0x8c   :  { %v85_v15 = vmul.f32 0.125, %v73_v8  ;;  %v366_v8 = vmov 0.0  }
  0x91   :  { %v82_v9 = vpop.f32.mrf.mxu2 }
  0x92   :  { %v88_v10 = vmul.f32 0.125, %v82_v9  ;;  %v282_v9 = vsel %vm185_vm8, 1.0, %v366_v8 }
  0x93   :  { %v76_v11 = vpop.f32.mrf.mxu0 }
  0x94   :  { %113 = vmatpush.msra.mxu1 %v88_v10  ;;  %289 = vmatpush.msra.mxu3 %v88_v10  ;;  %v86_v14 = vmul.f32 0.125, %v76_v11  ;;  %v367_v11 = vmov 0  }
  0x95   :  { %299 = vset.pattern.permute.xlu2 %v367_v11  ;;  %300 = vset.pattern.permute.xlu0 %v367_v11 }
  0x9b   :  { %v79_v12 = vpop.f32.mrf.mxu0 }
  0x9c   :  { %v87_v13 = vmul.f32 0.125, %v79_v12 }
  0x9e   :  { %114 = vmatpush.msra.mxu1 %v87_v13  ;;  %290 = vmatpush.msra.mxu3 %v87_v13 }
  0xa0   :  { %115 = vmatpush.msra.mxu1 %v86_v14  ;;  %291 = vmatpush.msra.mxu3 %v86_v14 }
  0xa2   :  { %116 = vmatpush.msra.mxu1 %v85_v15  ;;  %292 = vmatpush.msra.mxu3 %v85_v15 }
  0xa3   :  { %278 = vmatmul.msk.f32.vlgmr.msra.gmra.mxu1 %vm43_vm0, %v411_v16  ;;  %281 = vmatmul.msk.f32.vlgmr.msra.gmra.mxu3 %vm43_vm0, %v416_v17 }
  0xab   :  { %279 = vmatmul.msk.f32.gmra.mxu1 %vm43_vm0, %v425_v18 }
  0xb3   :  { %280 = vmatmul.msk.f32.gmra.mxu1 %vm43_vm0, %v432_v19 }
 0x120   :  { %v118_v20 = vpop.f32.mrf.mxu1 }
 0x121   :  { %v134_v21 = vmul.f32 0.2, %v118_v20  ;;  %vm130_vm1 = vcmp.gt.f32.partialorder %v118_v20, 0.0 }
 0x123   :  { %v138_v22 = vsel %vm130_vm1, %v118_v20, %v134_v21 }
 0x124   :  { %v143_v23 = vsel %vm142_vm2, %v138_v22, 0.0 }
 0x125   :  { %144 = vadd.xlane.f32.xlu0 %v143_v23 }
 0x126   :  { %v127_v30 = vpop.f32.mrf.mxu3 }
 0x127   :  { %v137_v33 = vmul.f32 0.2, %v127_v30  ;;  %vm133_vm5 = vcmp.gt.f32.partialorder %v127_v30, 0.0 }
 0x128   :  { %v121_v24 = vpop.f32.mrf.mxu1 }
 0x129   :  { %vm131_vm3 = vcmp.gt.f32.partialorder %v121_v24, 0.0  ;;  %v135_v25 = vmul.f32 0.2, %v121_v24  ;;  %v141_v34 = vsel %vm133_vm5, %v127_v30, %v137_v33 }
 0x12a   :  { %v152_v35 = vsel %vm142_vm2, %v141_v34, 0.0 }
 0x12b   :  { %v139_v26 = vsel %vm131_vm3, %v121_v24, %v135_v25 }
 0x12c   :  { %v146_v27 = vsel %vm142_vm2, %v139_v26, 0.0 }
 0x12d   :  { %147 = vadd.xlane.f32.xlu0 %v146_v27 }
 0x130   :  { %v124_v28 = vpop.f32.mrf.mxu1 }
 0x131   :  { %vm132_vm4 = vcmp.gt.f32.partialorder %v124_v28, 0.0  ;;  %v136_v29 = vmul.f32 0.2, %v124_v28 }
 0x133   :  { %v140_v31 = vsel %vm132_vm4, %v124_v28, %v136_v29 }
 0x134   :  { %v149_v32 = vsel %vm142_vm2, %v140_v31, 0.0 }
 0x135   :  { %150 = vadd.xlane.f32.xlu1 %v149_v32 }
 0x13d   :  { %153 = vadd.xlane.f32.xlu1 %v152_v35 }
 0x198   :  { %v145_v36 = vpop.xlane.xlu0 %144 }
 0x1a0   :  { %v148_v38 = vpop.xlane.xlu0 %147 }
 0x1a1   :  { %v155_v40 = vmax.f32 %v145_v36, %v148_v38 }
 0x1a8   :  { %v151_v37 = vpop.xlane.xlu1 %150 }
 0x1b0   :  { %v154_v39 = vpop.xlane.xlu1 %153 }
 0x1b1   :  { %v156_v41 = vmax.f32 %v151_v37, %v154_v39 }
 0x1b3   :  { %v157_v42 = vmax.f32 %v155_v40, %v156_v41 }
 0x1b5   :  { %v158_v43 = vrot.slane %v157_v42, 4 }
 0x1b7   :  { %v159_v44 = vmax.f32 %v157_v42, %v158_v43 }
 0x1b9   :  { %v160_v45 = vrot.slane %v159_v44, 2 }
 0x1bb   :  { %v161_v47 = vmax.f32 %v159_v44, %v160_v45 }
 0x1bd   :  { %v162_v48 = vrot.slane %v161_v47, 1 }
 0x1bf   :  { %v163_v50 = vmax.f32 %v161_v47, %v162_v48 }
 0x1c1   :  { %v167_v51 = vsub.f32 %v154_v39, %v163_v50  ;;  %v166_v52 = vsub.f32 %v151_v37, %v163_v50  ;;  %v165_v53 = vsub.f32 %v148_v38, %v163_v50  ;;  %v164_v54 = vsub.f32 %v145_v36, %v163_v50 }
 0x1c3   :  { %v174_v56 = vmul.f32 1.442695, %v167_v51  ;;  %v172_v57 = vmul.f32 1.442695, %v166_v52  ;;  %v170_v58 = vmul.f32 1.442695, %v165_v53 }
 0x1c4   :  { %v168_v59 = vmul.f32 1.442695, %v164_v54 }
 0x1c5   :  { %301 = vpow2.f32 %v174_v56 }
 0x1c6   :  { %303 = vpow2.f32 %v172_v57 }
 0x1c7   :  { %305 = vpow2.f32 %v170_v58 }
 0x1c8   :  { %307 = vpow2.f32 %v168_v59 }
 0x1cb   :  { %v302_v1 = vpop.eup %301 }
 0x1cc   :  { %v304_v2 = vpop.eup %303  ;;  %227 = vmatpush.msrb.mxu3 %v302_v1  ;;  %v191_v3 = vmul.f32 %v302_v1, %v416_v17 }
 0x1cd   :  { %v306_v4 = vpop.eup %305  ;;  %v190_v5 = vmul.f32 %v304_v2, %v432_v19 }
 0x1ce   :  { %207 = vmatpush.msrb.mxu2 %v191_v3  ;;  %228 = vmatpush.msrb.mxu3 %v304_v2  ;;  %v308_v6 = vpop.eup %307  ;;  %v189_v7 = vmul.f32 %v306_v4, %v425_v18 }
 0x1cf   :  { %v188_v10 = vmul.f32 %v308_v6, %v411_v16 }
 0x1d0   :  { %208 = vmatpush.msrb.mxu2 %v190_v5  ;;  %229 = vmatpush.msrb.mxu3 %v306_v4 }
 0x1d2   :  { %209 = vmatpush.msrb.mxu2 %v189_v7  ;;  %230 = vmatpush.msrb.mxu3 %v308_v6 }
 0x1d3   :  { %284 = vmatmul.msk.f32.vlgmr.msrb.gmra.mxu3 %vm43_vm0, %v282_v9 }
 0x1d4   :  { %210 = vmatpush.msrb.mxu2 %v188_v10 }
 0x1d5   :  { %283 = vmatmul.msk.f32.vlgmr.msrb.gmra.mxu2 %vm43_vm0, %v282_v9 }
 0x256   :  { %v232_v12 = vpop.f32.mrf.mxu3 }
 0x257   :  { %309 = vrcp.f32 %v232_v12  ;;  %v246_v17 = vand.u32 2147483648, %v232_v12  ;;  %v244_v19 = vand.u32 2147483647, %v232_v12  ;;  %vm240_vm10 = vweird.f32 %v232_v12 }
 0x258   :  { %v212_v23 = vpop.f32.mrf.mxu2 }
 0x259   :  { %v247_v16 = vor.u32 1.1754944e-38, %v246_v17  ;;  %vm245_vm12 = vcmp.eq.f32.partialorder %v244_v19, 8.507059e+37 }
 0x25d   :  { %v310_v13 = vpop.eup %309 }
 0x25e   :  { %v236_v14 = vmul.f32 %v310_v13, %v232_v12  ;;  %vm241_vm9 = vweird.f32 %v310_v13 }
 0x25f   :  { %vm242_vm11 = vmor %vm240_vm10, %vm241_vm9 }
 0x260   :  { %v237_v15 = vsub.f32 1.0, %v236_v14 }
 0x262   :  { %v238_v18 = vmul.f32 %v310_v13, %v237_v15 }
 0x264   :  { %v239_v20 = vadd.f32 %v310_v13, %v238_v18 }
 0x266   :  { %v243_v21 = vsel %vm242_vm11, %v310_v13, %v239_v20 }
 0x267   :  { %v248_v22 = vsel %vm245_vm12, %v247_v16, %v243_v21 }
 0x268   :  { %251 = vperm.xlu2 %299, %v248_v22  }
 0x2c2   :  { %v252_v24 = vpop.permute.xlu2 %251 }
 0x2c3   :  { %v254_v25 = vmul.f32 %v252_v24, %v212_v23 }
 0x2c5   :  { %256 = vst.msk [vmem:[#allocation5] sm:$0x3] %vm255_vm13, %v254_v25 }
 0x2c6   :  { %267 = dma.vmem_to_hbm [thread:$0]  %s263_s6, 32, %s265_s9, [#allocation4]  }
 0x2c7   :  { %361 = dma.done.wait [#allocation4], 32  }
 0x2c8   :  { %362 = vsyncadd [#allocation4], 4294967264 }
 0x2c9   :  { %272 = vsyncpa [#allocation3], 1 }
 0x2ca   :  { %273 = vsyncpa [#allocation4], 1 }

</bundles_post_ra>
